<compile_context>
chip_gen: v6e
topology: v6e:2x2x1
jax: 0.10.0
libtpu: 0.0.40
codegen_flags: <defaults>
</compile_context>

<pallas_src>
import functools

import jax
import jax.numpy as jnp
from jax.experimental import pallas as pl
from jax.experimental.pallas import tpu as pltpu


# ----------------------------- constants -----------------------------

COUT_P = 16          # padded Cout for both conv stages (bf16 sublane tile)
CONV1_KP = 32        # per-candidate K for conv1 (1*5*5 = 25 -> 32)
CONV2_KP = 160       # per-candidate K for conv2 (6*5*5 = 150 -> 160)
TM_MAX = 512         # max lane tile for the conv GEMM M dim
TN_MAX = 256         # max batch tile for the fc head (fills MXU output rows)

_COMPILER_PARAMS = pltpu.CompilerParams(
    dimension_semantics=("parallel",),
    vmem_limit_bytes=32 * 1024 * 1024,
)


def _round_up(a, b):
    return ((a + b - 1) // b) * b


# ----------------------------- Pallas kernels -----------------------------

def _conv_pool_kernel(w_ref, b_ref, p_ref, o_ref):
    """Fused conv-as-GEMM + 2x2/2 max-pool + bias + ReLU (single matmul).

    w_ref: (4*Cout_p, 4*K_p)  bf16  block-diagonal im2col weight
    b_ref: (Cout_p, 1)        f32   bias (zero padded)
    p_ref: (4*K_p, TM)        bf16  pool-candidate patches stacked along K
    o_ref: (Cout_p, TM)       bf16  pooled activations, lane-dense
    """
    r = jnp.dot(w_ref[...], p_ref[...], preferred_element_type=jnp.float32)
    c = o_ref.shape[0]
    # Max over the 4 candidate row-groups (16-row, sublane-aligned slices).
    m = jnp.maximum(jnp.maximum(r[0 * c:1 * c], r[1 * c:2 * c]),
                    jnp.maximum(r[2 * c:3 * c], r[3 * c:4 * c]))
    # max-pool commutes with the monotone per-channel bias + ReLU epilogue.
    o_ref[...] = jnp.maximum(m + b_ref[...], 0.0).astype(o_ref.dtype)


def _fc_head_kernel(x_ref, w1_ref, b1_ref, w2_ref, b2_ref, w3_ref, b3_ref,
                    o_ref):
    """fc1 -> ReLU -> fc2 -> ReLU -> fc3; intermediates stay in VMEM."""
    h = jnp.dot(x_ref[...], w1_ref[...], preferred_element_type=jnp.float32)
    h = jnp.maximum(h + b1_ref[...], 0.0)
    h = jnp.dot(h.astype(jnp.bfloat16), w2_ref[...],
                preferred_element_type=jnp.float32)
    h = jnp.maximum(h + b2_ref[...], 0.0)
    h = jnp.dot(h.astype(jnp.bfloat16), w3_ref[...],
                preferred_element_type=jnp.float32)
    o_ref[...] = (h + b3_ref[...]).astype(o_ref.dtype)


# ----------------------------- Pallas wrappers -----------------------------

def conv_pool(patches, w, b, cout_p, tm):
    """patches: (4*K_p, Mq) bf16, w: (4*Cout_p, 4*K_p) bf16, b: (Cout_p, 1)."""
    kp4, mq = patches.shape
    return pl.pallas_call(
        _conv_pool_kernel,
        out_shape=jax.ShapeDtypeStruct((cout_p, mq), jnp.bfloat16),
        grid=(mq // tm,),
        in_specs=[
            pl.BlockSpec((4 * cout_p, kp4), lambda i: (0, 0)),   # resident W
            pl.BlockSpec((cout_p, 1), lambda i: (0, 0)),         # resident b
            pl.BlockSpec((kp4, tm), lambda i: (0, i)),           # M-tiled P
        ],
        out_specs=pl.BlockSpec((cout_p, tm), lambda i: (0, i)),
        compiler_params=_COMPILER_PARAMS,
    )(w, b, patches)


def fc_head(flat_p, pp, tn):
    """flat_p: (N_p, 400) bf16 -> padded logits (N_p, 128) f32."""
    np_, kf = flat_p.shape
    fw1, fb1 = pp["fw1"], pp["fb1"]
    fw2, fb2 = pp["fw2"], pp["fb2"]
    fw3, fb3 = pp["fw3"], pp["fb3"]

    def _resident(a):
        return pl.BlockSpec(a.shape, lambda i: (0, 0))

    return pl.pallas_call(
        _fc_head_kernel,
        out_shape=jax.ShapeDtypeStruct((np_, 128), jnp.float32),
        grid=(np_ // tn,),
        in_specs=[
            pl.BlockSpec((tn, kf), lambda i: (i, 0)),            # N-tiled x
            _resident(fw1), _resident(fb1),
            _resident(fw2), _resident(fb2),
            _resident(fw3), _resident(fb3),
        ],
        out_specs=pl.BlockSpec((tn, 128), lambda i: (i, 0)),
        compiler_params=_COMPILER_PARAMS,
    )(flat_p, fw1, fb1, fw2, fb2, fw3, fb3)


# ----------------------------- Glue (pure data movement) -----------------------------

def _pool_ordered_patches(x, ksize, k_pad, m_pad):
    """im2col for a VALID conv followed by a 2x2/2 max-pool.

    x: (N, C, H, W) -> (4*k_pad, m_pad) bf16.
    Candidate q (conv-output pixel (2*py + q//2, 2*px + q%2)) occupies rows
    [q*k_pad:(q+1)*k_pad]; within a candidate, rows follow (c, i, j) tap
    order (matching w.reshape(Cout, C*k*k)); columns are (n, py, px), zero
    padded to m_pad.
    """
    # TODO(synk): build patches in-kernel (or via lax.conv_general_dilated_patches)
    # to cut the ~k*k HBM read inflation of XLA-materialized im2col on v5e.
    n, c_in, h, w = x.shape
    ho, wo = h - ksize + 1, w - ksize + 1
    hp, wp = ho // 2, wo // 2
    rows = []
    for c in range(c_in):
        for i in range(ksize):
            for j in range(ksize):
                win = x[:, c, i:i + ho, j:j + wo]              # (N, Ho, Wo)
                cand = jnp.stack(
                    [win[:, 0::2, 0::2], win[:, 0::2, 1::2],
                     win[:, 1::2, 0::2], win[:, 1::2, 1::2]], axis=0)
                rows.append(cand.reshape(4, n * hp * wp))
    pat = jnp.stack(rows, axis=1)                              # (4, K, M)
    k = c_in * ksize * ksize
    m = n * hp * wp
    pat = jnp.pad(pat, ((0, 0), (0, k_pad - k), (0, m_pad - m)))
    return pat.reshape(4 * k_pad, m_pad).astype(jnp.bfloat16)


# ----------------------------- Matched-precision JAX refs -----------------------------

def _conv_pool_ref(patches, w, b, cout_p, tm):
    del tm
    r = jnp.dot(w, patches, preferred_element_type=jnp.float32)
    m = jnp.max(r.reshape(4, cout_p, r.shape[-1]), axis=0)
    return jnp.maximum(m + b, 0.0).astype(jnp.bfloat16)


def _fc_head_ref(flat_p, pp, tn):
    del tn
    h = jnp.maximum(
        jnp.dot(flat_p, pp["fw1"], preferred_element_type=jnp.float32)
        + pp["fb1"], 0.0)
    h = jnp.maximum(
        jnp.dot(h.astype(jnp.bfloat16), pp["fw2"],
                preferred_element_type=jnp.float32) + pp["fb2"], 0.0)
    return jnp.dot(h.astype(jnp.bfloat16), pp["fw3"],
                   preferred_element_type=jnp.float32) + pp["fb3"]


# ----------------------------- LeNet-5 forward -----------------------------

def lenet5_forward(x, pp, *, use_pallas=True):
    """x: (N, 1, 28, 28) f32 NCHW -> logits (N, 10) f32."""
    n = x.shape[0]
    conv = conv_pool if use_pallas else _conv_pool_ref
    head = fc_head if use_pallas else _fc_head_ref

    # conv1 (5x5, pad=2) + ReLU + pool -> (16, mq1) bf16; rows 6..15 zero pad.
    xp = jnp.pad(x, ((0, 0), (0, 0), (2, 2), (2, 2)))
    m1 = n * 14 * 14
    tm1 = min(TM_MAX, _round_up(m1, 128))
    mq1 = _round_up(m1, tm1)
    pat1 = _pool_ordered_patches(xp, 5, CONV1_KP, mq1)
    y1 = conv(pat1, pp["w1"], pp["b1"], COUT_P, tm1)
    x2 = y1[:6, :m1].reshape(6, n, 14, 14).transpose(1, 0, 2, 3)  # (N,6,14,14)

    # conv2 (5x5, valid) + ReLU + pool -> (16, mq2) bf16.
    m2 = n * 5 * 5
    tm2 = min(TM_MAX, _round_up(m2, 128))
    mq2 = _round_up(m2, tm2)
    pat2 = _pool_ordered_patches(x2, 5, CONV2_KP, mq2)
    y2 = conv(pat2, pp["w2"], pp["b2"], COUT_P, tm2)

    # flatten in PyTorch NCHW order -> (N, 400), matches torch.flatten.
    flat = (y2[:, :m2].reshape(16, n, 5, 5).transpose(1, 0, 2, 3)
            .reshape(n, 400))

    # fc head on a row-padded batch; padded logit columns sliced off here.
    tn = min(TN_MAX, _round_up(n, 8))
    np_ = _round_up(n, tn)
    flat_p = jnp.pad(flat, ((0, np_ - n), (0, 0)))
    logits_p = head(flat_p, pp, tn)                               # (np_, 128)
    return logits_p[:n, :10]


# ----------------------------- Params -----------------------------

def init_params(key):
    ks = jax.random.split(key, 10)
    s = 0.1
    f32 = jnp.float32
    return {
        "conv1_w": jax.random.normal(ks[0], (6, 1, 5, 5), f32) * s,
        "conv1_b": jax.random.normal(ks[1], (6,), f32) * s,
        "conv2_w": jax.random.normal(ks[2], (16, 6, 5, 5), f32) * s,
        "conv2_b": jax.random.normal(ks[3], (16,), f32) * s,
        "fc1_w": jax.random.normal(ks[4], (120, 400), f32) * s,
        "fc1_b": jax.random.normal(ks[5], (120,), f32) * s,
        "fc2_w": jax.random.normal(ks[6], (84, 120), f32) * s,
        "fc2_b": jax.random.normal(ks[7], (84,), f32) * s,
        "fc3_w": jax.random.normal(ks[8], (10, 84), f32) * s,
        "fc3_b": jax.random.normal(ks[9], (10,), f32) * s,
    }


def prepare_params(p):
    """One-time weight prep (outside the hot path): im2col reshape, zero pad
    to MXU-friendly shapes, block-diagonalize conv weights over the 4 pool
    candidates, transpose FC weights, cast matmul operands to bf16."""
    bf16, f32 = jnp.bfloat16, jnp.float32

    def pad2(a, rows, cols):
        return jnp.pad(a, ((0, rows - a.shape[0]), (0, cols - a.shape[1])))

    def block_diag4(w):
        z = jnp.zeros_like(w)
        return jnp.block([[w, z, z, z],
                          [z, w, z, z],
                          [z, z, w, z],
                          [z, z, z, w]])

    w1 = pad2(p["conv1_w"].reshape(6, 25), COUT_P, CONV1_KP)     # (16, 32)
    w2 = pad2(p["conv2_w"].reshape(16, 150), COUT_P, CONV2_KP)   # (16, 160)
    return {
        # conv weights: block-diagonal over the 4 pool candidates.
        "w1": block_diag4(w1).astype(bf16),                      # (64, 128)
        "b1": jnp.pad(p["conv1_b"], (0, COUT_P - 6)).reshape(COUT_P, 1).astype(f32),
        "w2": block_diag4(w2).astype(bf16),                      # (64, 640)
        "b2": p["conv2_b"].reshape(COUT_P, 1).astype(f32),
        # fc: pre-transposed, all widths padded to 128 (zero pads are exact:
        # padded cols are 0 and padded rows multiply ReLU(0) = 0).
        "fw1": pad2(p["fc1_w"].T, 400, 128).astype(bf16),
        "fb1": jnp.pad(p["fc1_b"], (0, 8)).reshape(1, 128).astype(f32),
        "fw2": pad2(p["fc2_w"].T, 128, 128).astype(bf16),
        "fb2": jnp.pad(p["fc2_b"], (0, 44)).reshape(1, 128).astype(f32),
        "fw3": pad2(p["fc3_w"].T, 128, 128).astype(bf16),        # 10 -> 128 cols
        "fb3": jnp.pad(p["fc3_b"], (0, 118)).reshape(1, 128).astype(f32),
    }


# ----------------------------- Pure-f32 XLA reference -----------------------------

def ref_forward_f32(x, p):
    dn = ("NCHW", "OIHW", "NCHW")
    y = jax.lax.conv_general_dilated(x, p["conv1_w"], (1, 1), ((2, 2), (2, 2)),
                                     dimension_numbers=dn)
    y = jax.nn.relu(y + p["conv1_b"][None, :, None, None])
    y = jax.lax.reduce_window(y, -jnp.inf, jax.lax.max,
                              (1, 1, 2, 2), (1, 1, 2, 2), "VALID")
    y = jax.lax.conv_general_dilated(y, p["conv2_w"], (1, 1), "VALID",
                                     dimension_numbers=dn)
    y = jax.nn.relu(y + p["conv2_b"][None, :, None, None])
    y = jax.lax.reduce_window(y, -jnp.inf, jax.lax.max,
                              (1, 1, 2, 2), (1, 1, 2, 2), "VALID")
    y = y.reshape(y.shape[0], -1)
    y = jax.nn.relu(y @ p["fc1_w"].T + p["fc1_b"])
    y = jax.nn.relu(y @ p["fc2_w"].T + p["fc2_b"])
    return y @ p["fc3_w"].T + p["fc3_b"]


if __name__ == "__main__":
    key = jax.random.PRNGKey(0)
    k_x, k_p = jax.random.split(key)
    # MNIST-shaped input (28x28 is required by fc1's 16*5*5 = 400 features).
    x = jax.random.normal(k_x, (2, 1, 28, 28), jnp.float32)
    params = init_params(k_p)
    prep = prepare_params(params)

    fwd = jax.jit(functools.partial(lenet5_forward, use_pallas=True))
    out = jax.block_until_ready(fwd(x, prep))
    assert out.shape == (2, 10) and out.dtype == jnp.float32

    # Tight check vs a matched-precision (bf16 operands, f32 accumulation)
    # pure-JAX path that shares no Pallas code.
    ref_bf16 = jax.jit(functools.partial(lenet5_forward, use_pallas=False))(x, prep)
    assert jnp.allclose(out, ref_bf16, atol=1e-2, rtol=1e-2), \
        float(jnp.max(jnp.abs(out - ref_bf16)))

    # Loose check vs the full-f32 XLA reference (bf16 MXU operands -> ~1% err).
    ref = ref_forward_f32(x, params)
    assert jnp.allclose(out, ref, atol=1e-1, rtol=1e-1), \
        float(jnp.max(jnp.abs(out - ref)))

    print("KERNEL_OK")
</pallas_src>

<mosaic_0001>
module attributes {stable_mosaic.version = 11 : i64} {
  func.func @_conv_pool_kernel(%arg0: i32, %arg1: memref<64x128xbf16, #tpu.memory_space<vmem>>, %arg2: memref<16x1xf32, #tpu.memory_space<vmem>>, %arg3: memref<128x512xbf16, #tpu.memory_space<vmem>>, %arg4: memref<16x512xbf16, #tpu.memory_space<vmem>>) attributes {dimension_semantics = [#tpu.dimension_semantics<parallel>], iteration_bounds = array<i64: 1>, scalar_prefetch = 0 : i64, scratch_operands = 0 : i64, tpu.core_type = #tpu.core_type<tc>, window_params = [{pipeline_mode = #tpu.pipeline_mode<synchronous>, transform_indices = @transform_0, window_bounds = array<i64: 64, 128>}, {pipeline_mode = #tpu.pipeline_mode<synchronous>, transform_indices = @transform_1, window_bounds = array<i64: 16, 1>}, {transform_indices = @transform_2, window_bounds = array<i64: 128, 512>}, {transform_indices = @transform_3, window_bounds = array<i64: 16, 512>}]} {
    %c0 = arith.constant 0 : index
    %c0_0 = arith.constant 0 : index
    %0 = vector.load %arg1[%c0, %c0_0] : memref<64x128xbf16, #tpu.memory_space<vmem>>, vector<64x128xbf16>
    %c0_1 = arith.constant 0 : index
    %c0_2 = arith.constant 0 : index
    %1 = vector.load %arg3[%c0_1, %c0_2] : memref<128x512xbf16, #tpu.memory_space<vmem>>, vector<128x512xbf16>
    %cst = arith.constant dense<0.000000e+00> : vector<64x512xf32>
    %2 = tpu.matmul %0, %1, %cst {dimension_numbers = #tpu.dot_dimension_numbers<[1], [0], [0], [1], [0, 0, 1, 1], [], []>} : vector<64x128xbf16>, vector<128x512xbf16>, vector<64x512xf32> -> vector<64x512xf32>
    %3 = vector.extract_strided_slice %2 {offsets = [0, 0], sizes = [16, 512], strides = [1, 1]} : vector<64x512xf32> to vector<16x512xf32>
    %4 = vector.extract_strided_slice %2 {offsets = [16, 0], sizes = [16, 512], strides = [1, 1]} : vector<64x512xf32> to vector<16x512xf32>
    %5 = arith.maximumf %3, %4 : vector<16x512xf32>
    %6 = vector.extract_strided_slice %2 {offsets = [32, 0], sizes = [16, 512], strides = [1, 1]} : vector<64x512xf32> to vector<16x512xf32>
    %7 = vector.extract_strided_slice %2 {offsets = [48, 0], sizes = [16, 512], strides = [1, 1]} : vector<64x512xf32> to vector<16x512xf32>
    %8 = arith.maximumf %6, %7 : vector<16x512xf32>
    %9 = arith.maximumf %5, %8 : vector<16x512xf32>
    %c0_3 = arith.constant 0 : index
    %c0_4 = arith.constant 0 : index
    %10 = vector.load %arg2[%c0_3, %c0_4] : memref<16x1xf32, #tpu.memory_space<vmem>>, vector<16x1xf32>
    %11 = vector.broadcast %10 : vector<16x1xf32> to vector<16x512xf32>
    %12 = arith.addf %9, %11 : vector<16x512xf32>
    %cst_5 = arith.constant 0.000000e+00 : f32
    %13 = vector.broadcast %cst_5 : f32 to vector<16x512xf32>
    %14 = arith.maximumf %12, %13 : vector<16x512xf32>
    %15 = arith.truncf %14 : vector<16x512xf32> to vector<16x512xbf16>
    %c0_6 = arith.constant 0 : index
    %c0_7 = arith.constant 0 : index
    %16 = vector.load %arg4[%c0_6, %c0_7] : memref<16x512xbf16, #tpu.memory_space<vmem>>, vector<16x512xbf16>
    tpu.vector_store %arg4[%c0_6, %c0_7], %15 {strides = array<i32>} : memref<16x512xbf16, #tpu.memory_space<vmem>>, vector<16x512xbf16>,
    return
  }
  func.func @transform_0(%arg0: i32) -> (i32, i32) {
    %c0_i32 = arith.constant 0 : i32
    %c0_i32_0 = arith.constant 0 : i32
    %c0_i32_1 = arith.constant 0 : i32
    return %c0_i32, %c0_i32_0 : i32, i32
  }
  func.func @transform_1(%arg0: i32) -> (i32, i32) {
    %c0_i32 = arith.constant 0 : i32
    %c0_i32_0 = arith.constant 0 : i32
    %c0_i32_1 = arith.constant 0 : i32
    return %c0_i32, %c0_i32_0 : i32, i32
  }
  func.func @transform_2(%arg0: i32) -> (i32, i32) {
    %c0_i32 = arith.constant 0 : i32
    %c0_i32_0 = arith.constant 0 : i32
    return %c0_i32, %arg0 : i32, i32
  }
  func.func @transform_3(%arg0: i32) -> (i32, i32) {
    %c0_i32 = arith.constant 0 : i32
    %c0_i32_0 = arith.constant 0 : i32
    return %c0_i32, %arg0 : i32, i32
  }
}

module attributes {stable_mosaic.version = 11 : i64} {
  func.func @_conv_pool_kernel(%arg0: i32, %arg1: memref<64x640xbf16, #tpu.memory_space<vmem>>, %arg2: memref<16x1xf32, #tpu.memory_space<vmem>>, %arg3: memref<640x128xbf16, #tpu.memory_space<vmem>>, %arg4: memref<16x128xbf16, #tpu.memory_space<vmem>>) attributes {dimension_semantics = [#tpu.dimension_semantics<parallel>], iteration_bounds = array<i64: 1>, scalar_prefetch = 0 : i64, scratch_operands = 0 : i64, tpu.core_type = #tpu.core_type<tc>, window_params = [{pipeline_mode = #tpu.pipeline_mode<synchronous>, transform_indices = @transform_0, window_bounds = array<i64: 64, 640>}, {pipeline_mode = #tpu.pipeline_mode<synchronous>, transform_indices = @transform_1, window_bounds = array<i64: 16, 1>}, {transform_indices = @transform_2, window_bounds = array<i64: 640, 128>}, {transform_indices = @transform_3, window_bounds = array<i64: 16, 128>}]} {
    %c0 = arith.constant 0 : index
    %c0_0 = arith.constant 0 : index
    %0 = vector.load %arg1[%c0, %c0_0] : memref<64x640xbf16, #tpu.memory_space<vmem>>, vector<64x640xbf16>
    %c0_1 = arith.constant 0 : index
    %c0_2 = arith.constant 0 : index
    %1 = vector.load %arg3[%c0_1, %c0_2] : memref<640x128xbf16, #tpu.memory_space<vmem>>, vector<640x128xbf16>
    %cst = arith.constant dense<0.000000e+00> : vector<64x128xf32>
    %2 = tpu.matmul %0, %1, %cst {dimension_numbers = #tpu.dot_dimension_numbers<[1], [0], [0], [1], [0, 0, 1, 1], [], []>} : vector<64x640xbf16>, vector<640x128xbf16>, vector<64x128xf32> -> vector<64x128xf32>
    %3 = vector.extract_strided_slice %2 {offsets = [0, 0], sizes = [16, 128], strides = [1, 1]} : vector<64x128xf32> to vector<16x128xf32>
    %4 = vector.extract_strided_slice %2 {offsets = [16, 0], sizes = [16, 128], strides = [1, 1]} : vector<64x128xf32> to vector<16x128xf32>
    %5 = arith.maximumf %3, %4 : vector<16x128xf32>
    %6 = vector.extract_strided_slice %2 {offsets = [32, 0], sizes = [16, 128], strides = [1, 1]} : vector<64x128xf32> to vector<16x128xf32>
    %7 = vector.extract_strided_slice %2 {offsets = [48, 0], sizes = [16, 128], strides = [1, 1]} : vector<64x128xf32> to vector<16x128xf32>
    %8 = arith.maximumf %6, %7 : vector<16x128xf32>
    %9 = arith.maximumf %5, %8 : vector<16x128xf32>
    %c0_3 = arith.constant 0 : index
    %c0_4 = arith.constant 0 : index
    %10 = vector.load %arg2[%c0_3, %c0_4] : memref<16x1xf32, #tpu.memory_space<vmem>>, vector<16x1xf32>
    %11 = vector.broadcast %10 : vector<16x1xf32> to vector<16x128xf32>
    %12 = arith.addf %9, %11 : vector<16x128xf32>
    %cst_5 = arith.constant 0.000000e+00 : f32
    %13 = vector.broadcast %cst_5 : f32 to vector<16x128xf32>
    %14 = arith.maximumf %12, %13 : vector<16x128xf32>
    %15 = arith.truncf %14 : vector<16x128xf32> to vector<16x128xbf16>
    %c0_6 = arith.constant 0 : index
    %c0_7 = arith.constant 0 : index
    %16 = vector.load %arg4[%c0_6, %c0_7] : memref<16x128xbf16, #tpu.memory_space<vmem>>, vector<16x128xbf16>
    tpu.vector_store %arg4[%c0_6, %c0_7], %15 {strides = array<i32>} : memref<16x128xbf16, #tpu.memory_space<vmem>>, vector<16x128xbf16>,
    return
  }
  func.func @transform_0(%arg0: i32) -> (i32, i32) {
    %c0_i32 = arith.constant 0 : i32
    %c0_i32_0 = arith.constant 0 : i32
    %c0_i32_1 = arith.constant 0 : i32
    return %c0_i32, %c0_i32_0 : i32, i32
  }
  func.func @transform_1(%arg0: i32) -> (i32, i32) {
    %c0_i32 = arith.constant 0 : i32
    %c0_i32_0 = arith.constant 0 : i32
    %c0_i32_1 = arith.constant 0 : i32
    return %c0_i32, %c0_i32_0 : i32, i32
  }
  func.func @transform_2(%arg0: i32) -> (i32, i32) {
    %c0_i32 = arith.constant 0 : i32
    %c0_i32_0 = arith.constant 0 : i32
    return %c0_i32, %arg0 : i32, i32
  }
  func.func @transform_3(%arg0: i32) -> (i32, i32) {
    %c0_i32 = arith.constant 0 : i32
    %c0_i32_0 = arith.constant 0 : i32
    return %c0_i32, %arg0 : i32, i32
  }
}

module attributes {stable_mosaic.version = 11 : i64} {
  func.func @_fc_head_kernel(%arg0: i32, %arg1: memref<8x400xbf16, #tpu.memory_space<vmem>>, %arg2: memref<400x128xbf16, #tpu.memory_space<vmem>>, %arg3: memref<1x128xf32, #tpu.memory_space<vmem>>, %arg4: memref<128x128xbf16, #tpu.memory_space<vmem>>, %arg5: memref<1x128xf32, #tpu.memory_space<vmem>>, %arg6: memref<128x128xbf16, #tpu.memory_space<vmem>>, %arg7: memref<1x128xf32, #tpu.memory_space<vmem>>, %arg8: memref<8x128xf32, #tpu.memory_space<vmem>>) attributes {dimension_semantics = [#tpu.dimension_semantics<parallel>], iteration_bounds = array<i64: 1>, scalar_prefetch = 0 : i64, scratch_operands = 0 : i64, tpu.core_type = #tpu.core_type<tc>, window_params = [{transform_indices = @transform_0, window_bounds = array<i64: 8, 400>}, {pipeline_mode = #tpu.pipeline_mode<synchronous>, transform_indices = @transform_1, window_bounds = array<i64: 400, 128>}, {pipeline_mode = #tpu.pipeline_mode<synchronous>, transform_indices = @transform_2, window_bounds = array<i64: 1, 128>}, {pipeline_mode = #tpu.pipeline_mode<synchronous>, transform_indices = @transform_3, window_bounds = array<i64: 128, 128>}, {pipeline_mode = #tpu.pipeline_mode<synchronous>, transform_indices = @transform_4, window_bounds = array<i64: 1, 128>}, {pipeline_mode = #tpu.pipeline_mode<synchronous>, transform_indices = @transform_5, window_bounds = array<i64: 128, 128>}, {pipeline_mode = #tpu.pipeline_mode<synchronous>, transform_indices = @transform_6, window_bounds = array<i64: 1, 128>}, {transform_indices = @transform_7, window_bounds = array<i64: 8, 128>}]} {
    %c0 = arith.constant 0 : index
    %c0_0 = arith.constant 0 : index
    %0 = vector.load %arg1[%c0, %c0_0] : memref<8x400xbf16, #tpu.memory_space<vmem>>, vector<8x400xbf16>
    %c0_1 = arith.constant 0 : index
    %c0_2 = arith.constant 0 : index
    %1 = vector.load %arg2[%c0_1, %c0_2] : memref<400x128xbf16, #tpu.memory_space<vmem>>, vector<400x128xbf16>
    %cst = arith.constant dense<0.000000e+00> : vector<8x128xf32>
    %2 = tpu.matmul %0, %1, %cst {dimension_numbers = #tpu.dot_dimension_numbers<[1], [0], [0], [1], [0, 0, 1, 1], [], []>} : vector<8x400xbf16>, vector<400x128xbf16>, vector<8x128xf32> -> vector<8x128xf32>
    %c0_3 = arith.constant 0 : index
    %c0_4 = arith.constant 0 : index
    %3 = vector.load %arg3[%c0_3, %c0_4] : memref<1x128xf32, #tpu.memory_space<vmem>>, vector<1x128xf32>
    %4 = vector.broadcast %3 : vector<1x128xf32> to vector<8x128xf32>
    %5 = arith.addf %2, %4 : vector<8x128xf32>
    %cst_5 = arith.constant 0.000000e+00 : f32
    %6 = vector.broadcast %cst_5 : f32 to vector<8x128xf32>
    %7 = arith.maximumf %5, %6 : vector<8x128xf32>
    %8 = arith.truncf %7 : vector<8x128xf32> to vector<8x128xbf16>
    %c0_6 = arith.constant 0 : index
    %c0_7 = arith.constant 0 : index
    %9 = vector.load %arg4[%c0_6, %c0_7] : memref<128x128xbf16, #tpu.memory_space<vmem>>, vector<128x128xbf16>
    %cst_8 = arith.constant dense<0.000000e+00> : vector<8x128xf32>
    %10 = tpu.matmul %8, %9, %cst_8 {dimension_numbers = #tpu.dot_dimension_numbers<[1], [0], [0], [1], [0, 0, 1, 1], [], []>} : vector<8x128xbf16>, vector<128x128xbf16>, vector<8x128xf32> -> vector<8x128xf32>
    %c0_9 = arith.constant 0 : index
    %c0_10 = arith.constant 0 : index
    %11 = vector.load %arg5[%c0_9, %c0_10] : memref<1x128xf32, #tpu.memory_space<vmem>>, vector<1x128xf32>
    %12 = vector.broadcast %11 : vector<1x128xf32> to vector<8x128xf32>
    %13 = arith.addf %10, %12 : vector<8x128xf32>
    %cst_11 = arith.constant 0.000000e+00 : f32
    %14 = vector.broadcast %cst_11 : f32 to vector<8x128xf32>
    %15 = arith.maximumf %13, %14 : vector<8x128xf32>
    %16 = arith.truncf %15 : vector<8x128xf32> to vector<8x128xbf16>
    %c0_12 = arith.constant 0 : index
    %c0_13 = arith.constant 0 : index
    %17 = vector.load %arg6[%c0_12, %c0_13] : memref<128x128xbf16, #tpu.memory_space<vmem>>, vector<128x128xbf16>
    %cst_14 = arith.constant dense<0.000000e+00> : vector<8x128xf32>
    %18 = tpu.matmul %16, %17, %cst_14 {dimension_numbers = #tpu.dot_dimension_numbers<[1], [0], [0], [1], [0, 0, 1, 1], [], []>} : vector<8x128xbf16>, vector<128x128xbf16>, vector<8x128xf32> -> vector<8x128xf32>
    %c0_15 = arith.constant 0 : index
    %c0_16 = arith.constant 0 : index
    %19 = vector.load %arg7[%c0_15, %c0_16] : memref<1x128xf32, #tpu.memory_space<vmem>>, vector<1x128xf32>
    %20 = vector.broadcast %19 : vector<1x128xf32> to vector<8x128xf32>
    %21 = arith.addf %18, %20 : vector<8x128xf32>
    %c0_17 = arith.constant 0 : index
    %c0_18 = arith.constant 0 : index
    %22 = vector.load %arg8[%c0_17, %c0_18] : memref<8x128xf32, #tpu.memory_space<vmem>>, vector<8x128xf32>
    tpu.vector_store %arg8[%c0_17, %c0_18], %21 {strides = array<i32>} : memref<8x128xf32, #tpu.memory_space<vmem>>, vector<8x128xf32>,
    return
  }
  func.func @transform_0(%arg0: i32) -> (i32, i32) {
    %c0_i32 = arith.constant 0 : i32
    %c0_i32_0 = arith.constant 0 : i32
    return %arg0, %c0_i32 : i32, i32
  }
  func.func @transform_1(%arg0: i32) -> (i32, i32) {
    %c0_i32 = arith.constant 0 : i32
    %c0_i32_0 = arith.constant 0 : i32
    %c0_i32_1 = arith.constant 0 : i32
    return %c0_i32, %c0_i32_0 : i32, i32
  }
  func.func @transform_2(%arg0: i32) -> (i32, i32) {
    %c0_i32 = arith.constant 0 : i32
    %c0_i32_0 = arith.constant 0 : i32
    %c0_i32_1 = arith.constant 0 : i32
    return %c0_i32, %c0_i32_0 : i32, i32
  }
  func.func @transform_3(%arg0: i32) -> (i32, i32) {
    %c0_i32 = arith.constant 0 : i32
    %c0_i32_0 = arith.constant 0 : i32
    %c0_i32_1 = arith.constant 0 : i32
    return %c0_i32, %c0_i32_0 : i32, i32
  }
  func.func @transform_4(%arg0: i32) -> (i32, i32) {
    %c0_i32 = arith.constant 0 : i32
    %c0_i32_0 = arith.constant 0 : i32
    %c0_i32_1 = arith.constant 0 : i32
    return %c0_i32, %c0_i32_0 : i32, i32
  }
  func.func @transform_5(%arg0: i32) -> (i32, i32) {
    %c0_i32 = arith.constant 0 : i32
    %c0_i32_0 = arith.constant 0 : i32
    %c0_i32_1 = arith.constant 0 : i32
    return %c0_i32, %c0_i32_0 : i32, i32
  }
  func.func @transform_6(%arg0: i32) -> (i32, i32) {
    %c0_i32 = arith.constant 0 : i32
    %c0_i32_0 = arith.constant 0 : i32
    %c0_i32_1 = arith.constant 0 : i32
    return %c0_i32, %c0_i32_0 : i32, i32
  }
  func.func @transform_7(%arg0: i32) -> (i32, i32) {
    %c0_i32 = arith.constant 0 : i32
    %c0_i32_0 = arith.constant 0 : i32
    return %arg0, %c0_i32 : i32, i32
  }
}

</mosaic_0001>

<bundles_post_ra>
// kernel: lenet5_forward.3
= control target key start
LH: loop header
LB: loop body
LE: loop exit
PB: predicated region body
PF: predicated region fallthrough
CT: control target
= control target key end

     0   :  { %v567_v1 = vmov 0   ;;  %s723_s2 = inlined_call_operand.vmem [shape: bf16[128,512], index: 2, kind: input, shape index: {}]   ;;  %s724_s0 = inlined_call_operand.vmem [shape: bf16[64,128], index: 0, kind: input, shape index: {}]   ;;  %s725_s1 = inlined_call_operand.vmem [shape: f32[16,1], index: 1, kind: input, shape index: {}]   ;;  %s726_s3 = inlined_call_operand.vmem [shape: bf16[16,512], index: 3, kind: output, shape index: {}]  }
   0x1   :  { %v515_v0 = vld [vmem:[%s723_s2 + $0xe4] ss:$16 sps:$4 sm:$0xff]   ;;  %271 = vmatprep.mubr.bf16.mxu0 %v567_v1  ;;  %344 = vmatprep.mubr.bf16.mxu1 %v567_v1  ;;  %v517_v2 = vld [vmem:[%s723_s2 + $0xec] ss:$16 sps:$4 sm:$0xff]   ;;  %v519_v3 = vld [vmem:[%s723_s2 + $0xe0] ss:$16 sps:$4 sm:$0xff]  }
   0x2   :  { %514 = vset.pattern.permute.xlu0 %v567_v1  ;;  %239 = vmatprep.subr.bf16.mxu0 %v515_v0  ;;  %v520_v4 = vld [vmem:[%s723_s2 + $0xe8] ss:$16 sps:$4 sm:$0xff]   ;;  %v521_v5 = vld [vmem:[%s723_s2 + $0xc4] ss:$16 sps:$4 sm:$0xff]   ;;  %v523_v6 = vld [vmem:[%s723_s2 + $0xcc] ss:$16 sps:$4 sm:$0xff]  }
   0x3   :  { %312 = vmatprep.subr.bf16.mxu1 %v517_v2  ;;  %240 = vmatpush1.bf16.msra.mxu0 %v519_v3  ;;  %v525_v7 = vld [vmem:[%s723_s2 + $0xc0] ss:$16 sps:$4 sm:$0xff]   ;;  %v526_v8 = vld [vmem:[%s723_s2 + $0xc8] ss:$16 sps:$4 sm:$0xff]   ;;  %v527_v9 = vld [vmem:[%s723_s2 + $0xa4] ss:$16 sps:$4 sm:$0xff]  }
   0x4   :  { %313 = vmatpush1.bf16.msra.mxu1 %v520_v4  ;;  %241 = vmatprep.subr.bf16.mxu0 %v521_v5  ;;  %v529_v10 = vld [vmem:[%s723_s2 + $0xac] ss:$16 sps:$4 sm:$0xff]   ;;  %v531_v11 = vld [vmem:[%s723_s2 + $0xa0] ss:$16 sps:$4 sm:$0xff]   ;;  %v532_v12 = vld [vmem:[%s723_s2 + $0xa8] ss:$16 sps:$4 sm:$0xff]  }
   0x5   :  { %314 = vmatprep.subr.bf16.mxu1 %v523_v6  ;;  %v533_v13 = vld [vmem:[%s723_s2 + $0x84] ss:$16 sps:$4 sm:$0xff]   ;;  %v535_v14 = vld [vmem:[%s723_s2 + $0x8c] ss:$16 sps:$4 sm:$0xff]   ;;  %v537_v15 = vld [vmem:[%s723_s2 + $0x80] ss:$16 sps:$4 sm:$0xff]  }
   0x6   :  { %v538_v16 = vld [vmem:[%s723_s2 + $0x88] ss:$16 sps:$4 sm:$0xff]   ;;  %v539_v17 = vld [vmem:[%s723_s2 + $0x64] ss:$16 sps:$4 sm:$0xff]   ;;  %v541_v18 = vld [vmem:[%s723_s2 + $0x6c] ss:$16 sps:$4 sm:$0xff]  }
   0x7   :  { %242 = vmatpush1.bf16.msra.mxu0 %v525_v7  ;;  %v543_v19 = vld [vmem:[%s723_s2 + $0x60] ss:$16 sps:$4 sm:$0xff]   ;;  %v544_v20 = vld [vmem:[%s723_s2 + $0x68] ss:$16 sps:$4 sm:$0xff]   ;;  %v545_v21 = vld [vmem:[%s723_s2 + $0x44] ss:$16 sps:$4 sm:$0xff]  }
   0x8   :  { %315 = vmatpush1.bf16.msra.mxu1 %v526_v8  ;;  %243 = vmatprep.subr.bf16.mxu0 %v527_v9  ;;  %v547_v22 = vld [vmem:[%s723_s2 + $0x4c] ss:$16 sps:$4 sm:$0xff]   ;;  %v549_v23 = vld [vmem:[%s723_s2 + $0x40] ss:$16 sps:$4 sm:$0xff]   ;;  %v550_v24 = vld [vmem:[%s723_s2 + $0x48] ss:$16 sps:$4 sm:$0xff]  }
   0x9   :  { %316 = vmatprep.subr.bf16.mxu1 %v529_v10  ;;  %v551_v25 = vld [vmem:[%s723_s2 + $0x24] ss:$16 sps:$4 sm:$0xff]   ;;  %v553_v26 = vld [vmem:[%s723_s2 + $0x2c] ss:$16 sps:$4 sm:$0xff]   ;;  %v555_v27 = vld [vmem:[%s723_s2 + $0x20] ss:$16 sps:$4 sm:$0xff]  }
   0xa   :  { %v556_v28 = vld [vmem:[%s723_s2 + $0x28] ss:$16 sps:$4 sm:$0xff]   ;;  %v557_v29 = vld [vmem:[%s723_s2 + $0x4] ss:$16 sps:$4 sm:$0xff]   ;;  %v559_v30 = vld [vmem:[%s723_s2 + $0xc] ss:$16 sps:$4 sm:$0xff]  }
   0xb   :  { %244 = vmatpush1.bf16.msra.mxu0 %v531_v11  ;;  %v409_v31 = vld [vmem:[%s725_s1] sm:$0xff]  ;;  %v410_v32 = vld [vmem:[%s725_s1 + $0x8] sm:$0xff]  ;;  %v565_v37 = vld [vmem:[%s724_s0 + $0x10] sm:$0xff]  }
   0xc   :  { %317 = vmatpush1.bf16.msra.mxu1 %v532_v12  ;;  %245 = vmatprep.subr.bf16.mxu0 %v533_v13  ;;  %v561_v33 = vld [vmem:[%s723_s2] ss:$16 sps:$4 sm:$0xff]   ;;  %v562_v34 = vld [vmem:[%s723_s2 + $0x8] ss:$16 sps:$4 sm:$0xff]  }
   0xd   :  { %318 = vmatprep.subr.bf16.mxu1 %v535_v14  ;;  %413 = vperm.xlu0 %514, %v409_v31   ;;  %v563_v35 = vld [vmem:[%s724_s0] sm:$0xff]   ;;  %v564_v36 = vld [vmem:[%s724_s0 + $0x8] sm:$0xff]   ;;  %v566_v38 = vld [vmem:[%s724_s0 + $0x18] sm:$0xff]  }
   0xf   :  { %246 = vmatpush1.bf16.msra.mxu0 %v537_v15 }
  0x10   :  { %319 = vmatpush1.bf16.msra.mxu1 %v538_v16  ;;  %247 = vmatprep.subr.bf16.mxu0 %v539_v17 }
  0x11   :  { %320 = vmatprep.subr.bf16.mxu1 %v541_v18  ;;  %418 = vperm.xlu0 %514, %v410_v32  }
  0x13   :  { %248 = vmatpush1.bf16.msra.mxu0 %v543_v19 }
  0x14   :  { %321 = vmatpush1.bf16.msra.mxu1 %v544_v20  ;;  %249 = vmatprep.subr.bf16.mxu0 %v545_v21 }
  0x15   :  { %322 = vmatprep.subr.bf16.mxu1 %v547_v22 }
  0x17   :  { %250 = vmatpush1.bf16.msra.mxu0 %v549_v23 }
  0x18   :  { %323 = vmatpush1.bf16.msra.mxu1 %v550_v24  ;;  %251 = vmatprep.subr.bf16.mxu0 %v551_v25 }
  0x19   :  { %324 = vmatprep.subr.bf16.mxu1 %v553_v26 }
  0x1b   :  { %252 = vmatpush1.bf16.msra.mxu0 %v555_v27 }
  0x1c   :  { %325 = vmatpush1.bf16.msra.mxu1 %v556_v28  ;;  %253 = vmatprep.subr.bf16.mxu0 %v557_v29 }
  0x1d   :  { %326 = vmatprep.subr.bf16.mxu1 %v559_v30 }
  0x1f   :  { %254 = vmatpush1.bf16.msra.mxu0 %v561_v33 }
  0x20   :  { %327 = vmatpush1.bf16.msra.mxu1 %v562_v34 }
  0x22   :  { %272 = vmatmul.mubr.bf16.vlgmr.msra.gmra.mxu0 %v563_v35 }
  0x23   :  { %345 = vmatmul.mubr.bf16.vlgmr.msra.gmra.mxu1 %v563_v35  ;;  %281 = vmatprep.mubr.bf16.mxu0 %v567_v1 }
  0x24   :  { %354 = vmatprep.mubr.bf16.mxu1 %v567_v1 }
  0x2a   :  { %282 = vmatmul.mubr.bf16.gmra.mxu0 %v564_v36 }
  0x2b   :  { %355 = vmatmul.mubr.bf16.gmra.mxu1 %v564_v36  ;;  %291 = vmatprep.mubr.bf16.mxu0 %v567_v1 }
  0x2c   :  { %364 = vmatprep.mubr.bf16.mxu1 %v567_v1 }
  0x32   :  { %292 = vmatmul.mubr.bf16.gmra.mxu0 %v565_v37 }
  0x33   :  { %365 = vmatmul.mubr.bf16.gmra.mxu1 %v565_v37  ;;  %301 = vmatprep.mubr.bf16.mxu0 %v567_v1 }
  0x34   :  { %374 = vmatprep.mubr.bf16.mxu1 %v567_v1 }
  0x3a   :  { %302 = vmatmul.mubr.bf16.gmra.mxu0 %v566_v38 }
  0x3b   :  { %375 = vmatmul.mubr.bf16.gmra.mxu1 %v566_v38 }
  0x88   :  { %v414_v11 = vpop.permute.xlu0 %413 }
  0x8c   :  { %v419_v38 = vpop.permute.xlu0 %418 }
  0xe2   :  { %v273_v39 = vpop.f32.mrf.mxu0 }
  0xe3   :  { %v346_v40 = vpop.f32.mrf.mxu1 }
  0xe4   :  { %v275_v41 = vpop.f32.mrf.mxu0 }
  0xe5   :  { %v348_v42 = vpop.f32.mrf.mxu1 }
  0xe6   :  { %v277_v43 = vpop.f32.mrf.mxu0 }
  0xe7   :  { %v350_v44 = vpop.f32.mrf.mxu1 }
  0xe8   :  { %v279_v45 = vpop.f32.mrf.mxu0 }
  0xe9   :  { %v352_v46 = vpop.f32.mrf.mxu1 }
  0xea   :  { %v283_v47 = vpop.f32.mrf.mxu0 }
  0xeb   :  { %v356_v48 = vpop.f32.mrf.mxu1  ;;  %v385_v1 = vmax.f32 %v273_v39, %v283_v47 }
  0xec   :  { %v285_v49 = vpop.f32.mrf.mxu0  ;;  %v387_v2 = vmax.f32 %v346_v40, %v356_v48 }
  0xed   :  { %v358_v50 = vpop.f32.mrf.mxu1  ;;  %v386_v5 = vmax.f32 %v275_v41, %v285_v49 }
  0xee   :  { %v287_v51 = vpop.f32.mrf.mxu0  ;;  %v388_v6 = vmax.f32 %v348_v42, %v358_v50 }
  0xef   :  { %v360_v52 = vpop.f32.mrf.mxu1  ;;  %v389_v20 = vmax.f32 %v277_v43, %v287_v51 }
  0xf0   :  { %v289_v53 = vpop.f32.mrf.mxu0  ;;  %v391_v21 = vmax.f32 %v350_v44, %v360_v52 }
  0xf1   :  { %v362_v54 = vpop.f32.mrf.mxu1  ;;  %v390_v26 = vmax.f32 %v279_v45, %v289_v53 }
  0xf2   :  { %v293_v55 = vpop.f32.mrf.mxu0  ;;  %v392_v27 = vmax.f32 %v352_v46, %v362_v54 }
  0xf3   :  { %v366_v56 = vpop.f32.mrf.mxu1 }
  0xf4   :  { %v295_v57 = vpop.f32.mrf.mxu0 }
  0xf5   :  { %v368_v58 = vpop.f32.mrf.mxu1 }
  0xf6   :  { %v297_v59 = vpop.f32.mrf.mxu0 }
  0xf7   :  { %v370_v60 = vpop.f32.mrf.mxu1 }
  0xf8   :  { %v299_v61 = vpop.f32.mrf.mxu0 }
  0xf9   :  { %v372_v62 = vpop.f32.mrf.mxu1 }
  0xfa   :  { %v303_v63 = vpop.f32.mrf.mxu0 }
  0xfb   :  { %v376_v0 = vpop.f32.mrf.mxu1  ;;  %v393_v3 = vmax.f32 %v293_v55, %v303_v63 }
  0xfc   :  { %v395_v4 = vmax.f32 %v366_v56, %v376_v0  ;;  %v305_v7 = vpop.f32.mrf.mxu0 }
  0xfd   :  { %v378_v8 = vpop.f32.mrf.mxu1  ;;  %v401_v9 = vmax.f32 %v385_v1, %v393_v3  ;;  %v394_v12 = vmax.f32 %v295_v57, %v305_v7 }
  0xfe   :  { %v403_v10 = vmax.f32 %v387_v2, %v395_v4  ;;  %v396_v13 = vmax.f32 %v368_v58, %v378_v8  ;;  %v307_v14 = vpop.f32.mrf.mxu0 }
  0xff   :  { %v380_v15 = vpop.f32.mrf.mxu1  ;;  %v421_v16 = vadd.f32 %v414_v11, %v401_v9  ;;  %v402_v18 = vmax.f32 %v386_v5, %v394_v12  ;;  %v397_v22 = vmax.f32 %v297_v59, %v307_v14 }
 0x100   :  { %v423_v17 = vadd.f32 %v414_v11, %v403_v10  ;;  %v404_v19 = vmax.f32 %v388_v6, %v396_v13  ;;  %v399_v23 = vmax.f32 %v370_v60, %v380_v15  ;;  %v309_v24 = vpop.f32.mrf.mxu0 }
 0x101   :  { %v382_v25 = vpop.f32.mrf.mxu1  ;;  %v422_v28 = vadd.f32 %v414_v11, %v402_v18  ;;  %v405_v30 = vmax.f32 %v389_v20, %v397_v22  ;;  %v398_v32 = vmax.f32 %v299_v61, %v309_v24  ;;  %v429_v34 = vmax.f32 %v421_v16, 0.0 }
 0x102   :  { %v424_v29 = vadd.f32 %v414_v11, %v404_v19  ;;  %v407_v31 = vmax.f32 %v391_v21, %v399_v23  ;;  %v400_v33 = vmax.f32 %v372_v62, %v382_v25  ;;  %v431_v35 = vmax.f32 %v423_v17, 0.0 }
 0x103   :  { %v430_v36 = vmax.f32 %v422_v28, 0.0  ;;  %v425_v39 = vadd.f32 %v419_v38, %v405_v30  ;;  %v406_v41 = vmax.f32 %v390_v26, %v398_v32 }
 0x104   :  { %v432_v37 = vmax.f32 %v424_v29, 0.0  ;;  %v427_v40 = vadd.f32 %v419_v38, %v407_v31  ;;  %v408_v42 = vmax.f32 %v392_v27, %v400_v33 }
 0x105   :  { %v509_v43 = vpack.c.bf16 %v430_v36, %v429_v34  ;;  %v426_v47 = vadd.f32 %v419_v38, %v406_v41  ;;  %v433_v46 = vmax.f32 %v425_v39, 0.0 }
 0x106   :  { %v510_v44 = vpack.c.bf16 %v432_v37, %v431_v35  ;;  %v428_v45 = vadd.f32 %v419_v38, %v408_v42  ;;  %v435_v48 = vmax.f32 %v427_v40, 0.0 }
 0x107   :  { %461 = vst [vmem:[%s726_s3] sm:$0xff] %v509_v43  ;;  %v434_v49 = vmax.f32 %v426_v47, 0.0 }
 0x108   :  { %462 = vst [vmem:[%s726_s3 + $0x8] sm:$0xff] %v510_v44  ;;  %v436_v50 = vmax.f32 %v428_v45, 0.0 }
 0x109   :  { %v511_v51 = vpack.c.bf16 %v434_v49, %v433_v46 }
 0x10a   :  { %v512_v52 = vpack.c.bf16 %v436_v50, %v435_v48 }
 0x10b   :  { %463 = vst [vmem:[%s726_s3 + $0x10] sm:$0xff] %v511_v51 }
 0x10c   :  { %464 = vst [vmem:[%s726_s3 + $0x18] sm:$0xff] %v512_v52 }

// kernel: lenet5_forward.5
= control target key start
LH: loop header
LB: loop body
LE: loop exit
PB: predicated region body
PF: predicated region fallthrough
CT: control target
= control target key end

     0   :  { %v741_v0 = vmov 0   ;;  %vm249_vm0 = vcmask 130048   ;;  %v742_v32 = vmov 0.0   ;;  %vm743_vm1 = vmmov 0   ;;  %s952_s1 = inlined_call_operand.vmem [shape: bf16[400,128], index: 1, kind: input, shape index: {}]   ;;  %s953_s0 = inlined_call_operand.vmem [shape: bf16[8,400], index: 0, kind: input, shape index: {}]   ;;  %s954_s3 = inlined_call_operand.vmem [shape: bf16[128,128], index: 3, kind: input, shape index: {}]   ;;  %s955_s5 = inlined_call_operand.vmem [shape: bf16[128,128], index: 5, kind: input, shape index: {}]   ;;  %s956_s2 = inlined_call_operand.vmem [shape: f32[1,128], index: 2, kind: input, shape index: {}]   ;;  %s957_s4 = inlined_call_operand.vmem [shape: f32[1,128], index: 4, kind: input, shape index: {}]   ;;  %s958_s6 = inlined_call_operand.vmem [shape: f32[1,128], index: 6, kind: input, shape index: {}]   ;;  %s959_s7 = inlined_call_operand.vmem [shape: f32[8,128], index: 7, kind: output, shape index: {}]  }
   0x1   :  { %293 = vmatprep.subr.bf16.mxu1 %v741_v0  ;;  %v696_v1 = vld [vmem:[%s952_s1 + $0x78] sm:$0xff]   ;;  %v699_v4 = vld [vmem:[%s952_s1 + $0x70] sm:$0xff]   ;;  %v702_v7 = vld [vmem:[%s952_s1 + $0x68] sm:$0xff]  }
   0x2   :  { %v697_v2 = vld [vmem:[%s952_s1 + $0xb8] sm:$0xff]   ;;  %613 = vmatprep.subr.bf16.mxu0 %v696_v1  ;;  %v700_v5 = vld [vmem:[%s952_s1 + $0xb0] sm:$0xff]   ;;  %v703_v8 = vld [vmem:[%s952_s1 + $0xa8] sm:$0xff]  }
   0x3   :  { %v698_v3 = vld [vmem:[%s952_s1 + $0x38] sm:$0xff]   ;;  %294 = vmatpush1.bf16.msra.mxu1 %v697_v2  ;;  %v701_v6 = vld [vmem:[%s952_s1 + $0x30] sm:$0xff]   ;;  %v704_v9 = vld [vmem:[%s952_s1 + $0x28] sm:$0xff]  }
   0x4   :  { %614 = vmatpush3.bf16.msra.mxu0 %v698_v3  ;;  %295 = vmatprep.subr.bf16.mxu1 %v741_v0  ;;  %v705_v10 = vld [vmem:[%s952_s1 + $0x60] sm:$0xff]   ;;  %v708_v13 = vld [vmem:[%s952_s1 + $0x58] sm:$0xff]   ;;  %v711_v16 = vld [vmem:[%s952_s1 + $0x50] sm:$0xff]  }
   0x5   :  { %615 = vmatprep.subr.bf16.mxu0 %v699_v4  ;;  %v706_v11 = vld [vmem:[%s952_s1 + $0xa0] sm:$0xff]   ;;  %v709_v14 = vld [vmem:[%s952_s1 + $0x98] sm:$0xff]   ;;  %v712_v17 = vld [vmem:[%s952_s1 + $0x90] sm:$0xff]  }
   0x6   :  { %v707_v12 = vld [vmem:[%s952_s1 + $0x20] sm:$0xff]   ;;  %v710_v15 = vld [vmem:[%s952_s1 + $0x18] sm:$0xff]   ;;  %v713_v18 = vld [vmem:[%s952_s1 + $0x10] sm:$0xff]  }
   0x7   :  { %296 = vmatpush1.bf16.msra.mxu1 %v700_v5  ;;  %v714_v19 = vld [vmem:[%s952_s1 + $0x48] sm:$0xff]   ;;  %v27_v22 = vld [vmem:[%s953_s0] sm:$0xff]  ;;  %v725_v31 = vld [vmem:[%s954_s3 + $0x38] sm:$0xff]  }
   0x8   :  { %616 = vmatpush3.bf16.msra.mxu0 %v701_v6  ;;  %297 = vmatprep.subr.bf16.mxu1 %v741_v0  ;;  %v715_v20 = vld [vmem:[%s952_s1 + $0x88] sm:$0xff]   ;;  %v717_v23 = vld [vmem:[%s952_s1 + $0x40] sm:$0xff]   ;;  %v566_v24 = vcombine.high %v27_v22, %v27_v22  ;;  %v565_v30 = vcombine.low %v27_v22, %v27_v22  ;;  %v726_v34 = vld [vmem:[%s954_s3 + $0x30] sm:$0xff]  }
   0x9   :  { %617 = vmatprep.subr.bf16.mxu0 %v702_v7  ;;  %v716_v21 = vld [vmem:[%s952_s1 + $0x8] sm:$0xff]   ;;  %v718_v27 = vld [vmem:[%s952_s1 + $0x80] sm:$0xff]   ;;  %v729_v37 = vld [vmem:[%s954_s3 + $0x18] sm:$0xff]  }
   0xa   :  { %v28_v25 = vld [vmem:[%s953_s0 + $0x8] sm:$0xff]  ;;  %285 = vmatprep.mubr.bf16.mxu0 %v566_v24  ;;  %v719_v28 = vld [vmem:[%s952_s1] sm:$0xff]   ;;  %v730_v38 = vld [vmem:[%s954_s3 + $0x10] sm:$0xff]  }
   0xb   :  { %298 = vmatpush1.bf16.msra.mxu1 %v703_v8  ;;  %v568_v26 = vcombine.high %v28_v25, %v28_v25  ;;  %v722_v29 = vld [vmem:[%s952_s1 + $0xc0] sm:$0xff]   ;;  %v567_v33 = vcombine.low %v28_v25, %v28_v25  ;;  %v727_v35 = vld [vmem:[%s954_s3 + $0x28] sm:$0xff]   ;;  %v733_v41 = vld [vmem:[%s955_s5 + $0x38] sm:$0xff]  }
   0xc   :  { %618 = vmatpush3.bf16.msra.mxu0 %v704_v9  ;;  %299 = vmatprep.subr.bf16.mxu1 %v741_v0  ;;  %v728_v36 = vld [vmem:[%s954_s3 + $0x20] sm:$0xff]   ;;  %v731_v39 = vld [vmem:[%s954_s3 + $0x8] sm:$0xff]   ;;  %v734_v42 = vld [vmem:[%s955_s5 + $0x30] sm:$0xff]  }
   0xd   :  { %619 = vmatprep.subr.bf16.mxu0 %v705_v10  ;;  %594 = vmatprep.mubr.msk.bf16.mxu1 %vm249_vm0, %v568_v26  ;;  %v732_v40 = vld [vmem:[%s954_s3] sm:$0xff]   ;;  %v735_v43 = vld [vmem:[%s955_s5 + $0x28] sm:$0xff]   ;;  %v737_v45 = vld [vmem:[%s955_s5 + $0x18] sm:$0xff]  }
   0xe   :  { %v736_v44 = vld [vmem:[%s955_s5 + $0x20] sm:$0xff]   ;;  %v738_v46 = vld [vmem:[%s955_s5 + $0x10] sm:$0xff]   ;;  %v739_v61 = vld [vmem:[%s955_s5 + $0x8] sm:$0xff]  }
   0xf   :  { %300 = vmatpush1.bf16.msra.mxu1 %v706_v11  ;;  %v564_v49 = vld [vmem:[%s956_s2] ss:$0 sm:$0xff] }
  0x10   :  { %620 = vmatpush3.bf16.msra.mxu0 %v707_v12  ;;  %301 = vmatprep.subr.bf16.mxu1 %v741_v0  ;;  %v740_v62 = vld [vmem:[%s955_s5] sm:$0xff]  }
  0x11   :  { %621 = vmatprep.subr.bf16.mxu0 %v708_v13  ;;  %v595_v63 = vld [vmem:[%s957_s4] ss:$0 sm:$0xff] }
  0x12   :  { %v604_v7 = vld [vmem:[%s958_s6] ss:$0 sm:$0xff] }
  0x13   :  { %302 = vmatpush1.bf16.msra.mxu1 %v709_v14 }
  0x14   :  { %622 = vmatpush3.bf16.msra.mxu0 %v710_v15  ;;  %303 = vmatprep.subr.bf16.mxu1 %v741_v0 }
  0x15   :  { %623 = vmatprep.subr.bf16.mxu0 %v711_v16 }
  0x17   :  { %304 = vmatpush1.bf16.msra.mxu1 %v712_v17 }
  0x18   :  { %624 = vmatpush3.bf16.msra.mxu0 %v713_v18  ;;  %305 = vmatprep.subr.bf16.mxu1 %v741_v0 }
  0x19   :  { %625 = vmatprep.subr.bf16.mxu0 %v714_v19 }
  0x1b   :  { %306 = vmatpush1.bf16.msra.mxu1 %v715_v20 }
  0x1c   :  { %626 = vmatpush3.bf16.msra.mxu0 %v716_v21  ;;  %307 = vmatprep.subr.bf16.mxu1 %v741_v0 }
  0x1d   :  { %627 = vmatprep.subr.bf16.mxu0 %v717_v23 }
  0x1f   :  { %308 = vmatpush1.bf16.msra.mxu1 %v718_v27 }
  0x20   :  { %628 = vmatpush3.bf16.msra.mxu0 %v719_v28  ;;  %323 = vmatprep.subr.bf16.mxu1 %v741_v0 }
  0x21   :  { %653 = vmatprep.subr.bf16.mxu0 %v742_v32 }
  0x23   :  { %286 = vmatmul.mubr.bf16.vlgmr.msra.gmra.mxu0 %v565_v30  ;;  %324 = vmatpush2.bf16.msra.mxu1 %v722_v29 }
  0x24   :  { %654 = vmatpush3.bf16.msra.mxu0 %v725_v31  ;;  %673 = vmatprep.subr.bf16.mxu1 %v742_v32 }
  0x25   :  { %655 = vmatprep.subr.bf16.mxu0 %v742_v32  ;;  %669 = vmatprep.mubr.msk.bf16.mxu0 %vm743_vm1, %v742_v32 }
  0x26   :  { %326 = vmatmul.mubr.bf16.vlgmr.msra.gmra.mxu1 %v567_v33 }
  0x27   :  { %689 = vmatprep.mubr.msk.bf16.mxu1 %vm743_vm1, %v742_v32  ;;  %674 = vmatpush3.bf16.msra.mxu1 %v733_v41 }
  0x28   :  { %656 = vmatpush3.bf16.msra.mxu0 %v726_v34  ;;  %675 = vmatprep.subr.bf16.mxu1 %v742_v32 }
  0x29   :  { %657 = vmatprep.subr.bf16.mxu0 %v742_v32 }
  0x2b   :  { %676 = vmatpush3.bf16.msra.mxu1 %v734_v42 }
  0x2c   :  { %658 = vmatpush3.bf16.msra.mxu0 %v727_v35  ;;  %677 = vmatprep.subr.bf16.mxu1 %v742_v32 }
  0x2d   :  { %659 = vmatprep.subr.bf16.mxu0 %v742_v32 }
  0x2f   :  { %678 = vmatpush3.bf16.msra.mxu1 %v735_v43 }
  0x30   :  { %660 = vmatpush3.bf16.msra.mxu0 %v728_v36  ;;  %679 = vmatprep.subr.bf16.mxu1 %v742_v32 }
  0x31   :  { %661 = vmatprep.subr.bf16.mxu0 %v742_v32 }
  0x33   :  { %680 = vmatpush3.bf16.msra.mxu1 %v736_v44 }
  0x34   :  { %662 = vmatpush3.bf16.msra.mxu0 %v729_v37  ;;  %681 = vmatprep.subr.bf16.mxu1 %v742_v32 }
  0x35   :  { %663 = vmatprep.subr.bf16.mxu0 %v742_v32 }
  0x37   :  { %682 = vmatpush3.bf16.msra.mxu1 %v737_v45 }
  0x38   :  { %664 = vmatpush3.bf16.msra.mxu0 %v730_v38  ;;  %683 = vmatprep.subr.bf16.mxu1 %v742_v32 }
  0x39   :  { %665 = vmatprep.subr.bf16.mxu0 %v742_v32 }
  0x3b   :  { %684 = vmatpush3.bf16.msra.mxu1 %v738_v46 }
  0x3c   :  { %666 = vmatpush3.bf16.msra.mxu0 %v731_v39  ;;  %685 = vmatprep.subr.bf16.mxu1 %v742_v32 }
  0x3d   :  { %667 = vmatprep.subr.bf16.mxu0 %v742_v32 }
  0x3f   :  { %686 = vmatpush3.bf16.msra.mxu1 %v739_v61 }
  0x40   :  { %668 = vmatpush3.bf16.msra.mxu0 %v732_v40  ;;  %687 = vmatprep.subr.bf16.mxu1 %v742_v32 }
  0x43   :  { %688 = vmatpush3.bf16.msra.mxu1 %v740_v62 }
  0xe3   :  { %v629_v47 = vpop.f32.mrf.mxu0 }
  0xe5   :  { %v630_v48 = vpop.f32.mrf.mxu0 }
  0xe6   :  { %v631_v50 = vadd.f32 %v630_v48, %v629_v47  ;;  %v327_v51 = vpop.f32.mrf.mxu1 }
  0xe7   :  { %v632_v52 = vpop.f32.mrf.mxu0 }
  0xe8   :  { %v288_v53 = vadd.f32 %v631_v50, %v564_v49  ;;  %v329_v54 = vpop.f32.mrf.mxu1 }
  0xe9   :  { %v633_v55 = vpop.f32.mrf.mxu0 }
  0xea   :  { %v328_v56 = vadd.f32 %v327_v51, %v288_v53  ;;  %v330_v57 = vpop.f32.mrf.mxu1 }
  0xec   :  { %v333_v58 = vmax.f32 %v328_v56, 0.0  ;;  %v331_v59 = vpop.f32.mrf.mxu1 }
  0xee   :  { %v334_v60 = vpack.c.bf16 %v333_v58, %v333_v58 }
  0xf0   :  { %670 = vmatmul.mubr.bf16.vlgmr.msra.gmra.mxu0 %v334_v60 }
 0x1b0   :  { %v440_v0 = vpop.f32.mrf.mxu0 }
 0x1b1   :  { %v441_v1 = vadd.f32 %v595_v63, %v440_v0 }
 0x1b2   :  { %v671_v2 = vpop.f32.mrf.mxu0 }
 0x1b3   :  { %v446_v3 = vmax.f32 %v441_v1, 0.0 }
 0x1b4   :  { %v443_v4 = vpop.f32.mrf.mxu0 }
 0x1b5   :  { %v447_v5 = vpack.c.bf16 %v446_v3, %v446_v3 }
 0x1b6   :  { %v672_v6 = vpop.f32.mrf.mxu0 }
 0x1b7   :  { %690 = vmatmul.mubr.bf16.vlgmr.msra.gmra.mxu1 %v447_v5 }
 0x277   :  { %v553_v8 = vpop.f32.mrf.mxu1 }
 0x278   :  { %v554_v9 = vadd.f32 %v604_v7, %v553_v8 }
 0x279   :  { %v691_v10 = vpop.f32.mrf.mxu1 }
 0x27a   :  { %559 = vst [vmem:[%s959_s7] sm:$0xff] %v554_v9 }
 0x27b   :  { %v556_v11 = vpop.f32.mrf.mxu1 }
 0x27d   :  { %v692_v12 = vpop.f32.mrf.mxu1 }

// kernel: lenet5_forward.4
= control target key start
LH: loop header
LB: loop body
LE: loop exit
PB: predicated region body
PF: predicated region fallthrough
CT: control target
= control target key end

     0   :  { %v965_v1 = vmov 0   ;;  %s1175_s2 = inlined_call_operand.vmem [shape: bf16[640,128], index: 2, kind: input, shape index: {}]   ;;  %s1176_s0 = inlined_call_operand.vmem [shape: bf16[64,640], index: 0, kind: input, shape index: {}]   ;;  %s1177_s1 = inlined_call_operand.vmem [shape: f32[16,1], index: 1, kind: input, shape index: {}]   ;;  %s1178_s3 = inlined_call_operand.vmem [shape: bf16[16,128], index: 3, kind: output, shape index: {}]  }
   0x1   :  { %v897_v0 = vld [vmem:[%s1175_s2 + $0x78] sm:$0xff]   ;;  %896 = vset.pattern.permute.xlu0 %v965_v1  ;;  %v901_v5 = vld [vmem:[%s1175_s2 + $0x70] sm:$0xff]   ;;  %v905_v9 = vld [vmem:[%s1175_s2 + $0x68] sm:$0xff]  }
   0x2   :  { %v898_v2 = vld [vmem:[%s1175_s2 + $0xf8] sm:$0xff]   ;;  %763 = vmatprep.subr.bf16.mxu0 %v897_v0  ;;  %v902_v6 = vld [vmem:[%s1175_s2 + $0xf0] sm:$0xff]   ;;  %v906_v10 = vld [vmem:[%s1175_s2 + $0xe8] sm:$0xff]  }
   0x3   :  { %v899_v3 = vld [vmem:[%s1175_s2 + $0x38] sm:$0xff]   ;;  %803 = vmatprep.subr.bf16.mxu1 %v898_v2  ;;  %v903_v7 = vld [vmem:[%s1175_s2 + $0x30] sm:$0xff]   ;;  %v907_v11 = vld [vmem:[%s1175_s2 + $0x28] sm:$0xff]  }
   0x4   :  { %v900_v4 = vld [vmem:[%s1175_s2 + $0xb8] sm:$0xff]   ;;  %764 = vmatpush3.bf16.msra.mxu0 %v899_v3  ;;  %v904_v8 = vld [vmem:[%s1175_s2 + $0xb0] sm:$0xff]   ;;  %v908_v12 = vld [vmem:[%s1175_s2 + $0xa8] sm:$0xff]  }
   0x5   :  { %804 = vmatpush3.bf16.msra.mxu1 %v900_v4  ;;  %765 = vmatprep.subr.bf16.mxu0 %v901_v5  ;;  %v909_v13 = vld [vmem:[%s1175_s2 + $0x60] sm:$0xff]   ;;  %v913_v17 = vld [vmem:[%s1175_s2 + $0x58] sm:$0xff]   ;;  %v917_v21 = vld [vmem:[%s1175_s2 + $0x50] sm:$0xff]  }
   0x6   :  { %805 = vmatprep.subr.bf16.mxu1 %v902_v6  ;;  %v910_v14 = vld [vmem:[%s1175_s2 + $0xe0] sm:$0xff]   ;;  %v914_v18 = vld [vmem:[%s1175_s2 + $0xd8] sm:$0xff]   ;;  %v918_v22 = vld [vmem:[%s1175_s2 + $0xd0] sm:$0xff]  }
   0x7   :  { %v911_v15 = vld [vmem:[%s1175_s2 + $0x20] sm:$0xff]   ;;  %v915_v19 = vld [vmem:[%s1175_s2 + $0x18] sm:$0xff]   ;;  %v919_v23 = vld [vmem:[%s1175_s2 + $0x10] sm:$0xff]  }
   0x8   :  { %766 = vmatpush3.bf16.msra.mxu0 %v903_v7  ;;  %v912_v16 = vld [vmem:[%s1175_s2 + $0xa0] sm:$0xff]   ;;  %v916_v20 = vld [vmem:[%s1175_s2 + $0x98] sm:$0xff]   ;;  %v920_v24 = vld [vmem:[%s1175_s2 + $0x90] sm:$0xff]  }
   0x9   :  { %806 = vmatpush3.bf16.msra.mxu1 %v904_v8  ;;  %767 = vmatprep.subr.bf16.mxu0 %v905_v9  ;;  %v921_v25 = vld [vmem:[%s1175_s2 + $0x48] sm:$0xff]   ;;  %v925_v29 = vld [vmem:[%s1175_s2 + $0x40] sm:$0xff]   ;;  %v935_v37 = vld [vmem:[%s1175_s2 + $0x138] sm:$0xff]  }
   0xa   :  { %807 = vmatprep.subr.bf16.mxu1 %v906_v10  ;;  %v922_v26 = vld [vmem:[%s1175_s2 + $0xc8] sm:$0xff]   ;;  %v926_v30 = vld [vmem:[%s1175_s2 + $0xc0] sm:$0xff]   ;;  %v936_v38 = vld [vmem:[%s1175_s2 + $0x130] sm:$0xff]  }
   0xb   :  { %v923_v27 = vld [vmem:[%s1175_s2 + $0x8] sm:$0xff]   ;;  %v927_v31 = vld [vmem:[%s1175_s2] sm:$0xff]   ;;  %v947_v46 = vld [vmem:[%s1176_s0 + $0x5c] ss:$20 sps:$4 sm:$0xff]  }
   0xc   :  { %768 = vmatpush3.bf16.msra.mxu0 %v907_v11  ;;  %v924_v28 = vld [vmem:[%s1175_s2 + $0x88] sm:$0xff]   ;;  %v928_v32 = vld [vmem:[%s1175_s2 + $0x80] sm:$0xff]   ;;  %v951_v47 = vld [vmem:[%s1175_s2 + $0x118] sm:$0xff]  }
   0xd   :  { %808 = vmatpush3.bf16.msra.mxu1 %v908_v12  ;;  %769 = vmatprep.subr.bf16.mxu0 %v909_v13  ;;  %v929_v33 = vld [vmem:[%s1176_s0] ss:$20 sps:$4 sm:$0xff]   ;;  %v931_v34 = vld [vmem:[%s1176_s0 + $0x4] ss:$20 sps:$4 sm:$0xff]   ;;  %v932_v35 = vld [vmem:[%s1176_s0 + $0x8] ss:$20 sps:$4 sm:$0xff]  }
   0xe   :  { %809 = vmatprep.subr.bf16.mxu1 %v910_v14  ;;  %v934_v36 = vld [vmem:[%s1176_s0 + $0xc] ss:$20 sps:$4 sm:$0xff]   ;;  %495 = vmatprep.mubr.bf16.mxu0 %v931_v34  ;;  %v939_v40 = vld [vmem:[%s1176_s0 + $0x34] ss:$20 sps:$4 sm:$0xff]   ;;  %v942_v43 = vld [vmem:[%s1176_s0 + $0x30] ss:$20 sps:$4 sm:$0xff]  }
   0xf   :  { %560 = vmatprep.mubr.bf16.mxu1 %v934_v36  ;;  %v937_v39 = vld [vmem:[%s1176_s0 + $0x2c] ss:$20 sps:$4 sm:$0xff]   ;;  %v941_v41 = vld [vmem:[%s1176_s0 + $0x28] ss:$20 sps:$4 sm:$0xff]   ;;  %v949_v48 = vld [vmem:[%s1176_s0 + $0x50] ss:$20 sps:$4 sm:$0xff]  }
  0x10   :  { %770 = vmatpush3.bf16.msra.mxu0 %v911_v15  ;;  %v943_v42 = vld [vmem:[%s1175_s2 + $0x128] sm:$0xff]   ;;  %v944_v45 = vld [vmem:[%s1175_s2 + $0x120] sm:$0xff]   ;;  %v953_v50 = vld [vmem:[%s1176_s0 + $0x7c] ss:$20 sps:$4 sm:$0xff]  }
  0x11   :  { %810 = vmatpush3.bf16.msra.mxu1 %v912_v16  ;;  %771 = vmatprep.subr.bf16.mxu0 %v913_v17  ;;  %v945_v44 = vld [vmem:[%s1176_s0 + $0x54] ss:$20 sps:$4 sm:$0xff]   ;;  %v950_v49 = vld [vmem:[%s1176_s0 + $0x58] ss:$20 sps:$4 sm:$0xff]   ;;  %v664_v53 = vld [vmem:[%s1177_s1] sm:$0xff] }
  0x12   :  { %811 = vmatprep.subr.bf16.mxu1 %v914_v18  ;;  %v955_v51 = vld [vmem:[%s1176_s0 + $0x84] ss:$20 sps:$4 sm:$0xff]   ;;  %v952_v52 = vld [vmem:[%s1175_s2 + $0x110] sm:$0xff]   ;;  %v959_v54 = vld [vmem:[%s1175_s2 + $0x108] sm:$0xff]   ;;  %668 = vperm.xlu0 %896, %v664_v53  }
  0x13   :  { %v957_v55 = vld [vmem:[%s1176_s0 + $0x78] ss:$20 sps:$4 sm:$0xff]   ;;  %v958_v56 = vld [vmem:[%s1176_s0 + $0x80] ss:$20 sps:$4 sm:$0xff]   ;;  %v961_v57 = vld [vmem:[%s1176_s0 + $0x10] ss:$20 sps:$4 sm:$0xff]  }
  0x14   :  { %772 = vmatpush3.bf16.msra.mxu0 %v915_v19  ;;  %v962_v58 = vld [vmem:[%s1176_s0 + $0x60] ss:$20 sps:$4 sm:$0xff]   ;;  %v665_v60 = vld [vmem:[%s1177_s1 + $0x8] sm:$0xff] }
  0x15   :  { %812 = vmatpush3.bf16.msra.mxu1 %v916_v20  ;;  %773 = vmatprep.subr.bf16.mxu0 %v917_v21  ;;  %v960_v59 = vld [vmem:[%s1175_s2 + $0x100] sm:$0xff]   ;;  %v963_v61 = vld [vmem:[%s1176_s0 + $0x38] ss:$20 sps:$4 sm:$0xff]   ;;  %v964_v62 = vld [vmem:[%s1176_s0 + $0x88] ss:$20 sps:$4 sm:$0xff]  }
  0x16   :  { %813 = vmatprep.subr.bf16.mxu1 %v918_v22  ;;  %673 = vperm.xlu0 %896, %v665_v60  }
  0x18   :  { %774 = vmatpush3.bf16.msra.mxu0 %v919_v23 }
  0x19   :  { %814 = vmatpush3.bf16.msra.mxu1 %v920_v24  ;;  %775 = vmatprep.subr.bf16.mxu0 %v921_v25 }
  0x1a   :  { %815 = vmatprep.subr.bf16.mxu1 %v922_v26 }
  0x1c   :  { %776 = vmatpush3.bf16.msra.mxu0 %v923_v27 }
  0x1d   :  { %816 = vmatpush3.bf16.msra.mxu1 %v924_v28  ;;  %777 = vmatprep.subr.bf16.mxu0 %v925_v29 }
  0x1e   :  { %817 = vmatprep.subr.bf16.mxu1 %v926_v30 }
  0x20   :  { %778 = vmatpush3.bf16.msra.mxu0 %v927_v31 }
  0x21   :  { %818 = vmatpush3.bf16.msra.mxu1 %v928_v32  ;;  %855 = vmatprep.subr.bf16.mxu0 %v935_v37 }
  0x22   :  { %879 = vmatprep.subr.bf16.mxu1 %v935_v37 }
  0x23   :  { %496 = vmatmul.mubr.bf16.vlgmr.msra.gmra.mxu0 %v929_v33 }
  0x24   :  { %561 = vmatmul.mubr.bf16.vlgmr.msra.gmra.mxu1 %v932_v35  ;;  %856 = vmatpush3.bf16.msra.mxu0 %v935_v37 }
  0x25   :  { %887 = vmatpush3.bf16.msra.mxu1 %v935_v37  ;;  %857 = vmatprep.subr.bf16.mxu0 %v936_v38 }
  0x26   :  { %880 = vmatprep.subr.bf16.mxu1 %v936_v38  ;;  %503 = vmatprep.mubr.bf16.mxu0 %v937_v39 }
  0x27   :  { %568 = vmatprep.mubr.bf16.mxu1 %v939_v40 }
  0x28   :  { %858 = vmatpush3.bf16.msra.mxu0 %v936_v38 }
  0x29   :  { %888 = vmatpush3.bf16.msra.mxu1 %v936_v38  ;;  %859 = vmatprep.subr.bf16.mxu0 %v943_v42 }
  0x2a   :  { %881 = vmatprep.subr.bf16.mxu1 %v943_v42 }
  0x2b   :  { %504 = vmatmul.mubr.bf16.gmra.mxu0 %v941_v41 }
  0x2c   :  { %569 = vmatmul.mubr.bf16.gmra.mxu1 %v942_v43  ;;  %511 = vmatprep.mubr.bf16.mxu0 %v945_v44 }
  0x2d   :  { %860 = vmatpush3.bf16.msra.mxu0 %v943_v42  ;;  %576 = vmatprep.mubr.bf16.mxu1 %v947_v46 }
  0x2e   :  { %889 = vmatpush3.bf16.msra.mxu1 %v943_v42  ;;  %861 = vmatprep.subr.bf16.mxu0 %v944_v45 }
  0x2f   :  { %882 = vmatprep.subr.bf16.mxu1 %v944_v45 }
  0x31   :  { %862 = vmatpush3.bf16.msra.mxu0 %v944_v45 }
  0x32   :  { %890 = vmatpush3.bf16.msra.mxu1 %v944_v45  ;;  %863 = vmatprep.subr.bf16.mxu0 %v951_v47 }
  0x33   :  { %512 = vmatmul.mubr.bf16.gmra.mxu0 %v949_v48  ;;  %883 = vmatprep.subr.bf16.mxu1 %v951_v47 }
  0x34   :  { %577 = vmatmul.mubr.bf16.gmra.mxu1 %v950_v49  ;;  %519 = vmatprep.mubr.bf16.mxu0 %v953_v50 }
  0x35   :  { %864 = vmatpush3.bf16.msra.mxu0 %v951_v47  ;;  %584 = vmatprep.mubr.bf16.mxu1 %v955_v51 }
  0x36   :  { %891 = vmatpush3.bf16.msra.mxu1 %v951_v47  ;;  %865 = vmatprep.subr.bf16.mxu0 %v952_v52 }
  0x37   :  { %884 = vmatprep.subr.bf16.mxu1 %v952_v52 }
  0x39   :  { %866 = vmatpush3.bf16.msra.mxu0 %v952_v52 }
  0x3a   :  { %892 = vmatpush3.bf16.msra.mxu1 %v952_v52  ;;  %867 = vmatprep.subr.bf16.mxu0 %v959_v54 }
  0x3b   :  { %520 = vmatmul.mubr.bf16.gmra.mxu0 %v957_v55  ;;  %885 = vmatprep.subr.bf16.mxu1 %v959_v54 }
  0x3c   :  { %585 = vmatmul.mubr.bf16.gmra.mxu1 %v958_v56  ;;  %871 = vmatprep.mubr.bf16.mxu0 %v961_v57 }
  0x3d   :  { %868 = vmatpush3.bf16.msra.mxu0 %v959_v54  ;;  %875 = vmatprep.mubr.bf16.mxu1 %v962_v58 }
  0x3e   :  { %893 = vmatpush3.bf16.msra.mxu1 %v959_v54  ;;  %869 = vmatprep.subr.bf16.mxu0 %v960_v59 }
  0x3f   :  { %886 = vmatprep.subr.bf16.mxu1 %v960_v59 }
  0x41   :  { %870 = vmatpush3.bf16.msra.mxu0 %v960_v59 }
  0x42   :  { %894 = vmatpush3.bf16.msra.mxu1 %v960_v59 }
  0x44   :  { %872 = vmatmul.mubr.bf16.vlgmr.msra.gmra.mxu0 %v963_v61 }
  0x45   :  { %876 = vmatmul.mubr.bf16.vlgmr.msra.gmra.mxu1 %v964_v62 }
  0xe3   :  { %v779_v63 = vpop.f32.mrf.mxu0 }
  0xe4   :  { %v819_v0 = vpop.f32.mrf.mxu1 }
  0xe5   :  { %v780_v1 = vpop.f32.mrf.mxu0 }
  0xe6   :  { %v820_v2 = vpop.f32.mrf.mxu1  ;;  %v781_v28 = vadd.f32 %v780_v1, %v779_v63 }
  0xe7   :  { %v782_v3 = vpop.f32.mrf.mxu0  ;;  %v821_v29 = vadd.f32 %v820_v2, %v819_v0 }
  0xe8   :  { %v822_v4 = vpop.f32.mrf.mxu1 }
  0xe9   :  { %v783_v5 = vpop.f32.mrf.mxu0  ;;  %v563_v43 = vadd.f32 %v821_v29, %v781_v28 }
  0xea   :  { %v823_v6 = vpop.f32.mrf.mxu1  ;;  %v784_v39 = vadd.f32 %v783_v5, %v782_v3  ;;  %v669_v5 = vpop.permute.xlu0 %668 }
  0xeb   :  { %v785_v7 = vpop.f32.mrf.mxu0  ;;  %v824_v40 = vadd.f32 %v823_v6, %v822_v4 }
  0xec   :  { %v825_v8 = vpop.f32.mrf.mxu1 }
  0xed   :  { %v786_v9 = vpop.f32.mrf.mxu0  ;;  %v566_v63 = vadd.f32 %v824_v40, %v784_v39 }
  0xee   :  { %v826_v10 = vpop.f32.mrf.mxu1  ;;  %v787_v30 = vadd.f32 %v786_v9, %v785_v7 }
  0xef   :  { %v788_v11 = vpop.f32.mrf.mxu0  ;;  %v827_v31 = vadd.f32 %v826_v10, %v825_v8 }
  0xf0   :  { %v828_v12 = vpop.f32.mrf.mxu1 }
  0xf1   :  { %v789_v13 = vpop.f32.mrf.mxu0  ;;  %v571_v41 = vadd.f32 %v827_v31, %v787_v30 }
  0xf2   :  { %v829_v14 = vpop.f32.mrf.mxu1  ;;  %v790_v44 = vadd.f32 %v789_v13, %v788_v11 }
  0xf3   :  { %v791_v15 = vpop.f32.mrf.mxu0  ;;  %v830_v45 = vadd.f32 %v829_v14, %v828_v12 }
  0xf4   :  { %v831_v16 = vpop.f32.mrf.mxu1 }
  0xf5   :  { %v792_v17 = vpop.f32.mrf.mxu0  ;;  %v574_v61 = vadd.f32 %v830_v45, %v790_v44 }
  0xf6   :  { %v832_v18 = vpop.f32.mrf.mxu1  ;;  %v793_v33 = vadd.f32 %v792_v17, %v791_v15  ;;  %v674_v15 = vpop.permute.xlu0 %673 }
  0xf7   :  { %v794_v19 = vpop.f32.mrf.mxu0  ;;  %v833_v34 = vadd.f32 %v832_v18, %v831_v16 }
  0xf8   :  { %v834_v20 = vpop.f32.mrf.mxu1 }
  0xf9   :  { %v795_v21 = vpop.f32.mrf.mxu0  ;;  %v579_v48 = vadd.f32 %v833_v34, %v793_v33 }
  0xfa   :  { %v835_v22 = vpop.f32.mrf.mxu1  ;;  %v796_v46 = vadd.f32 %v795_v21, %v794_v19 }
  0xfb   :  { %v797_v23 = vpop.f32.mrf.mxu0  ;;  %v836_v49 = vadd.f32 %v835_v22, %v834_v20 }
  0xfc   :  { %v837_v24 = vpop.f32.mrf.mxu1 }
  0xfd   :  { %v798_v25 = vpop.f32.mrf.mxu0  ;;  %v582_v3 = vadd.f32 %v836_v49, %v796_v46 }
  0xfe   :  { %v838_v26 = vpop.f32.mrf.mxu1  ;;  %v799_v36 = vadd.f32 %v798_v25, %v797_v23 }
  0xff   :  { %v800_v27 = vpop.f32.mrf.mxu0  ;;  %v839_v37 = vadd.f32 %v838_v26, %v837_v24 }
 0x100   :  { %v840_v32 = vpop.f32.mrf.mxu1 }
 0x101   :  { %v801_v35 = vpop.f32.mrf.mxu0  ;;  %v587_v52 = vadd.f32 %v839_v37, %v799_v36 }
 0x102   :  { %v841_v38 = vpop.f32.mrf.mxu1  ;;  %v802_v50 = vadd.f32 %v801_v35, %v800_v27 }
 0x103   :  { %v842_v51 = vadd.f32 %v841_v38, %v840_v32 }
 0x104   :  { %v873_v42 = vpop.f32.mrf.mxu0 }
 0x105   :  { %v877_v47 = vpop.f32.mrf.mxu1  ;;  %v636_v54 = vadd.f32 %v873_v42, %v571_v41  ;;  %v590_v1 = vadd.f32 %v842_v51, %v802_v50 }
 0x106   :  { %v627_v53 = vpop.f32.mrf.mxu0  ;;  %v652_v57 = vadd.f32 %v877_v47, %v587_v52 }
 0x107   :  { %v628_v55 = vadd.f32 %v627_v53, %v563_v43  ;;  %v643_v56 = vpop.f32.mrf.mxu1 }
 0x108   :  { %v644_v58 = vadd.f32 %v643_v56, %v579_v48  ;;  %v874_v59 = vpop.f32.mrf.mxu0 }
 0x109   :  { %v658_v60 = vmax.f32 %v628_v55, %v636_v54  ;;  %v878_v62 = vpop.f32.mrf.mxu1  ;;  %v639_v4 = vadd.f32 %v874_v59, %v574_v61 }
 0x10a   :  { %v660_v0 = vmax.f32 %v644_v58, %v652_v57  ;;  %v630_v2 = vpop.f32.mrf.mxu0  ;;  %v655_v8 = vadd.f32 %v878_v62, %v590_v1 }
 0x10b   :  { %v631_v6 = vadd.f32 %v630_v2, %v566_v63  ;;  %v646_v7 = vpop.f32.mrf.mxu1 }
 0x10c   :  { %v662_v9 = vmax.f32 %v658_v60, %v660_v0  ;;  %v647_v10 = vadd.f32 %v646_v7, %v582_v3 }
 0x10d   :  { %v659_v11 = vmax.f32 %v631_v6, %v639_v4 }
 0x10e   :  { %v661_v12 = vmax.f32 %v647_v10, %v655_v8  ;;  %v676_v13 = vadd.f32 %v669_v5, %v662_v9 }
 0x110   :  { %v663_v14 = vmax.f32 %v659_v11, %v661_v12  ;;  %v678_v17 = vmax.f32 %v676_v13, 0.0 }
 0x112   :  { %v677_v16 = vadd.f32 %v674_v15, %v663_v14 }
 0x114   :  { %v679_v18 = vmax.f32 %v677_v16, 0.0 }
 0x116   :  { %v761_v19 = vpack.c.bf16 %v679_v18, %v678_v17 }
 0x118   :  { %762 = vst [vmem:[%s1178_s3] sm:$0xff] %v761_v19  }

</bundles_post_ra>
